<compile_context>
chip_gen: v7x
topology: tpu7x:2x2x1
jax: 0.10.0
libtpu: 0.0.40
codegen_flags: <defaults>
</compile_context>

<pallas_src>
import functools

import jax
import jax.numpy as jnp
from jax import lax
from jax.experimental import pallas as pl
from jax.experimental.pallas import tpu as pltpu

NUM_CLASSES = 5
CLASS_WEIGHTS = jnp.array(
    [0.0080999, 0.25035065, 0.43587076, 0.49093265, 3.81474603], jnp.float32
)
TP_MAX = 32768     # lane tile per grid step (multiple of 128); ~3 MiB double-buffered
CHUNK_MAX = 512    # in-kernel sub-chunk width (bounds vreg live ranges)
UNROLL = 8         # partial unroll of the chunk loop (LLO visibility w/o bloat)


def _compound_loss_kernel(logits_ref, tgt_ref, acc_ref, *, tp, chunk, unroll,
                          ragged, valid_last):
    """Accumulate per-class statistics for one (batch, outer, inner) grid step.

    acc_ref is a (4, C, 128) lane-partial accumulator, resident across the
    innermost (pixel) grid axis.  Rows:
      0: inter_c   = sum_p softmax_c * [tgt == c]
      1: ps_sum_c  = sum_p softmax_c
      2: cnt_c     = sum_p [tgt == c]
      3: ce_c      = sum_p [tgt == c] * (logsumexp - logit_c)
    The final 128-lane / outer / batch reduce happens once in the JAX wrapper.
    """
    i = pl.program_id(2)

    @pl.when(i == 0)
    def _():
        acc_ref[...] = jnp.zeros(acc_ref.shape, acc_ref.dtype)

    c = logits_ref.shape[0]
    n_chunks = tp // chunk
    n_folds = chunk // 128

    # hoisted out of the hot loop (JAX does not CSE broadcast_in_dim)
    cls = lax.broadcasted_iota(jnp.int32, (c, 1), 0)       # class ids on sublanes
    lane = lax.broadcasted_iota(jnp.int32, (1, chunk), 1)  # lane ids within a chunk

    def fold128(a):
        # collapse `chunk` lanes to a 128-wide partial: static 128-aligned lane
        # slices + VALU adds (keeps XLU out of the steady state).
        r = a[:, 0:128]
        for f in range(1, n_folds):
            r = r + a[:, f * 128:(f + 1) * 128]
        return r

    def make_body(masked):
        def chunk_body(j, carry):
            inter_p, ps_p, cnt_p, ce_p = carry
            off = pl.multiple_of(j * chunk, chunk)
            x = logits_ref[:, pl.ds(off, chunk)].astype(jnp.float32)  # (C, chunk)
            t = tgt_ref[:, pl.ds(off, chunk)]                         # (1, chunk)

            if masked:
                # only the globally-last tile can be ragged; valid_last is static
                maskb = (off + lane) < valid_last
                # mask BEFORE max/exp so out-of-bounds garbage can't become NaN/Inf
                x = jnp.where(maskb, x, 0.0)
                # fold the mask into the target: -1 never matches a class id
                t = jnp.where(maskb, t, -1)

            # numerically stable softmax / logsumexp over the class (sublane) axis
            m = jnp.max(x, axis=0, keepdims=True)                     # (1, chunk)
            e = jnp.exp(x - m)
            s = jnp.sum(e, axis=0, keepdims=True)
            # EUP approx reciprocal + one Newton step (~f32-exact, off the VALU)
            r = pl.reciprocal(s, approx=True)
            r = r * (2.0 - s * r)
            ps = e * r
            lse = m + jnp.log(s)

            is_t = cls == t                                           # (C, chunk)
            if masked:
                ps = ps * maskb.astype(jnp.float32)

            return (inter_p + fold128(jnp.where(is_t, ps, 0.0)),
                    ps_p + fold128(ps),
                    cnt_p + fold128(jnp.where(is_t, 1.0, 0.0)),
                    ce_p + fold128(jnp.where(is_t, lse - x, 0.0)))
        return chunk_body

    def accumulate(masked):
        zero = jnp.zeros((c, 128), jnp.float32)
        inter_p, ps_p, cnt_p, ce_p = lax.fori_loop(
            0, n_chunks, make_body(masked), (zero, zero, zero, zero),
            unroll=unroll)
        acc_ref[0, :, :] += inter_p
        acc_ref[1, :, :] += ps_p
        acc_ref[2, :, :] += cnt_p
        acc_ref[3, :, :] += ce_p

    if not ragged:
        accumulate(False)
    else:
        is_last = jnp.logical_and(
            pl.program_id(1) == pl.num_programs(1) - 1,
            pl.program_id(2) == pl.num_programs(2) - 1)

        @pl.when(jnp.logical_not(is_last))
        def _():
            accumulate(False)

        @pl.when(is_last)
        def _():
            accumulate(True)


def compound_loss(out_nchw, tgt, ce_weight=0.2, use_weighted_ce=True):
    """JAX/Pallas equivalent of CompoundLoss.forward(out, tgt).

    out_nchw: (N, C, H, W) float logits (f32 or bf16), tgt: (N, H, W) class ids.
    """
    N, C, H, W = out_nchw.shape
    assert C == NUM_CLASSES
    HW = H * W
    P = N * HW

    # free reshapes -- no transpose / class-pad / dtype cast through HBM
    logits = out_nchw.reshape(N, C, HW)
    tgt3 = tgt.reshape(N, 1, HW).astype(jnp.int32)

    if HW >= 128:
        # tp is a multiple of 128 <= HW; the trailing block may be partial and
        # is neutralized by the in-kernel mask (no jnp.pad HBM round trip).
        tp = min(TP_MAX, (HW // 128) * 128)
        lanes = HW
    else:
        # tiny spatial extent: lane-pad once (negligible at this size)
        lanes = 128
        tp = 128
        logits = jnp.pad(logits, ((0, 0), (0, 0), (0, 128 - HW)))
        tgt3 = jnp.pad(tgt3, ((0, 0), (0, 0), (0, 128 - HW)))

    n_blocks = pl.cdiv(lanes, tp)
    ragged = (HW % tp) != 0                 # only the final tile can be partial
    valid_last = HW - (n_blocks - 1) * tp   # static valid-lane count of that tile

    # split the pixel axis into (outer parallel, inner arbitrary) so v7x's two
    # TensorCores both get work even when N == 1; harmless on v5e/v6e.
    n_outer = 2 if (n_blocks % 2 == 0 and n_blocks >= 2) else 1
    n_inner = n_blocks // n_outer

    chunk = next(cc for cc in (CHUNK_MAX, 256, 128) if tp % cc == 0)
    unroll = max(1, min(UNROLL, tp // chunk))

    kernel = functools.partial(_compound_loss_kernel, tp=tp, chunk=chunk,
                               unroll=unroll, ragged=ragged,
                               valid_last=valid_last)

    acc = pl.pallas_call(
        kernel,
        out_shape=jax.ShapeDtypeStruct((N, n_outer, 4, C, 128), jnp.float32),
        grid_spec=pltpu.PrefetchScalarGridSpec(
            num_scalar_prefetch=0,
            grid=(N, n_outer, n_inner),
            in_specs=[
                pl.BlockSpec((None, C, tp),
                             lambda n, o, i: (n, 0, o * n_inner + i)),
                pl.BlockSpec((None, 1, tp),
                             lambda n, o, i: (n, 0, o * n_inner + i)),
            ],
            out_specs=pl.BlockSpec((None, None, 4, C, 128),
                                   lambda n, o, i: (n, o, 0, 0, 0)),
        ),
        compiler_params=pltpu.CompilerParams(
            dimension_semantics=("parallel", "parallel", "arbitrary"),
        ),
    )(logits, tgt3)

    stats = jnp.sum(acc, axis=(0, 1, 4))        # (4, C): one batch+outer+lane reduce
    inter, ps_sum, cnt, ce_pc = stats[0], stats[1], stats[2], stats[3]

    if use_weighted_ce:
        w = CLASS_WEIGHTS
        ce_l = jnp.sum(w * ce_pc) / jnp.sum(w * cnt)   # torch weighted-mean CE
    else:
        ce_l = jnp.sum(ce_pc) / jnp.float32(P)         # plain mean CE

    union = ps_sum + cnt
    dice_l = 1.0 - jnp.mean((2.0 * inter + 1e-6) / (union + 1e-6))
    return ce_weight * ce_l + (1.0 - ce_weight) * dice_l


def _reference_loss(out, tgt, ce_weight=0.2, use_weighted_ce=True):
    """Pure-JAX mirror of the PyTorch forward (for verification)."""
    logp = jax.nn.log_softmax(out, axis=1)
    ps = jnp.exp(logp)
    nll = -jnp.take_along_axis(logp, tgt[:, None].astype(jnp.int32), axis=1)[:, 0]
    if use_weighted_ce:
        wpix = CLASS_WEIGHTS[tgt]
        ce_l = jnp.sum(wpix * nll) / jnp.sum(wpix)
    else:
        ce_l = jnp.mean(nll)
    toh = jnp.transpose(jax.nn.one_hot(tgt, NUM_CLASSES, dtype=jnp.float32),
                        (0, 3, 1, 2))
    inter = jnp.sum(ps * toh, axis=(0, 2, 3))
    union = jnp.sum(ps, axis=(0, 2, 3)) + jnp.sum(toh, axis=(0, 2, 3))
    dice_l = 1.0 - jnp.mean((2.0 * inter + 1e-6) / (union + 1e-6))
    return ce_weight * ce_l + (1.0 - ce_weight) * dice_l


if __name__ == "__main__":
    key = jax.random.PRNGKey(0)
    k1, k2, k3, k4 = jax.random.split(key, 4)

    # primary small test (aligned path)
    N, C, H, W = 2, NUM_CLASSES, 16, 16
    out = jax.random.normal(k1, (N, C, H, W), dtype=jnp.float32)
    tgt = jax.random.randint(k2, (N, H, W), 0, NUM_CLASSES, dtype=jnp.int32)
    loss = jax.block_until_ready(compound_loss(out, tgt, 0.2, True))
    ref = jax.block_until_ready(_reference_loss(out, tgt, 0.2, True))
    assert jnp.allclose(loss, ref, rtol=1e-5, atol=1e-5), (loss, ref)

    # ragged shape: exercises the partial trailing block, last-tile mask and
    # the (outer parallel) pixel split
    H2, W2 = 20, 20
    out2 = jax.random.normal(k3, (1, C, H2, W2), dtype=jnp.float32)
    tgt2 = jax.random.randint(k4, (1, H2, W2), 0, NUM_CLASSES, dtype=jnp.int32)
    loss2 = jax.block_until_ready(compound_loss(out2, tgt2, 0.2, True))
    ref2 = jax.block_until_ready(_reference_loss(out2, tgt2, 0.2, True))
    assert jnp.allclose(loss2, ref2, rtol=1e-5, atol=1e-5), (loss2, ref2)

    print("KERNEL_OK")
</pallas_src>

<mosaic_0001>
module attributes {stable_mosaic.version = 11 : i64} {
  func.func @_compound_loss_kernel(%arg0: i32, %arg1: i32, %arg2: i32, %arg3: memref<1x5x256xf32, #tpu.memory_space<vmem>>, %arg4: memref<1x1x256xi32, #tpu.memory_space<vmem>>, %arg5: memref<1x1x4x5x128xf32, #tpu.memory_space<vmem>>) attributes {dimension_semantics = [#tpu.dimension_semantics<parallel>, #tpu.dimension_semantics<parallel>, #tpu.dimension_semantics<arbitrary>], iteration_bounds = array<i64: 2, 1, 1>, scalar_prefetch = 0 : i64, scratch_operands = 0 : i64, tpu.core_type = #tpu.core_type<tc>, window_params = [{transform_indices = @transform_0, window_bounds = array<i64: 1, 5, 256>}, {transform_indices = @transform_1, window_bounds = array<i64: 1, 1, 256>}, {transform_indices = @transform_2, window_bounds = array<i64: 1, 1, 4, 5, 128>}]} {
    %c0_i32 = arith.constant 0 : i32
    %0 = arith.cmpi eq, %arg2, %c0_i32 : i32
    %1 = arith.extui %0 : i1 to i32
    %c0_i32_0 = arith.constant 0 : i32
    %2 = arith.cmpi ne, %1, %c0_i32_0 : i32
    scf.if %2 {
      %cst_49 = arith.constant 0.000000e+00 : f32
      %81 = vector.broadcast %cst_49 : f32 to vector<4x5x128xf32>
      %c0_50 = arith.constant 0 : index
      %c0_51 = arith.constant 0 : index
      %c0_52 = arith.constant 0 : index
      %c0_53 = arith.constant 0 : index
      %c0_54 = arith.constant 0 : index
      %82 = vector.load %arg5[%c0_50, %c0_51, %c0_52, %c0_53, %c0_54] : memref<1x1x4x5x128xf32, #tpu.memory_space<vmem>>, vector<1x1x4x5x128xf32>
      %83 = vector.shape_cast %82 : vector<1x1x4x5x128xf32> to vector<4x5x128xf32>
      %84 = vector.shape_cast %81 : vector<4x5x128xf32> to vector<1x1x4x5x128xf32>
      tpu.vector_store %arg5[%c0_50, %c0_51, %c0_52, %c0_53, %c0_54], %84 {strides = array<i32>} : memref<1x1x4x5x128xf32, #tpu.memory_space<vmem>>, vector<1x1x4x5x128xf32>,
    } else {
    }
    %3 = tpu.iota {dimensions = array<i32: 0>} : vector<5x1xi32>
    %cst = arith.constant 0.000000e+00 : f32
    %4 = vector.broadcast %cst : f32 to vector<5x128xf32>
    %c0_i32_1 = arith.constant 0 : i32
    %c256_i32 = arith.constant 256 : i32
    %5 = arith.muli %c0_i32_1, %c256_i32 : i32
    %6 = tpu.assume_multiple %5, 256 : i32
    %c0 = arith.constant 0 : index
    %c0_2 = arith.constant 0 : index
    %7 = arith.index_cast %6 : i32 to index
    %8 = vector.load %arg3[%c0, %c0_2, %7] : memref<1x5x256xf32, #tpu.memory_space<vmem>>, vector<1x5x256xf32>
    %9 = vector.shape_cast %8 : vector<1x5x256xf32> to vector<5x256xf32>
    %c0_3 = arith.constant 0 : index
    %c0_4 = arith.constant 0 : index
    %10 = arith.index_cast %6 : i32 to index
    %11 = vector.load %arg4[%c0_3, %c0_4, %10] : memref<1x1x256xi32, #tpu.memory_space<vmem>>, vector<1x1x256xi32>
    %12 = vector.shape_cast %11 : vector<1x1x256xi32> to vector<1x256xi32>
    %cst_5 = arith.constant dense<0xFF800000> : vector<256xf32>
    %13 = vector.multi_reduction <maximumf>, %9, %cst_5 [0] : vector<5x256xf32> to vector<256xf32>
    %14 = vector.shape_cast %13 : vector<256xf32> to vector<1x256xf32>
    %15 = vector.broadcast %14 : vector<1x256xf32> to vector<5x256xf32>
    %16 = arith.subf %9, %15 : vector<5x256xf32>
    %17 = math.exp %16 : vector<5x256xf32>
    %cst_6 = arith.constant dense<0.000000e+00> : vector<256xf32>
    %18 = vector.multi_reduction <add>, %17, %cst_6 [0] : vector<5x256xf32> to vector<256xf32>
    %19 = vector.shape_cast %18 : vector<256xf32> to vector<1x256xf32>
    %20 = tpu.reciprocal %19 {approx = true} : vector<1x256xf32> -> vector<1x256xf32>
    %21 = arith.mulf %19, %20 : vector<1x256xf32>
    %cst_7 = arith.constant 2.000000e+00 : f32
    %22 = vector.broadcast %cst_7 : f32 to vector<1x256xf32>
    %23 = arith.subf %22, %21 : vector<1x256xf32>
    %24 = arith.mulf %20, %23 : vector<1x256xf32>
    %25 = vector.broadcast %24 : vector<1x256xf32> to vector<5x256xf32>
    %26 = arith.mulf %17, %25 : vector<5x256xf32>
    %27 = math.log %19 : vector<1x256xf32>
    %28 = arith.addf %14, %27 : vector<1x256xf32>
    %29 = vector.broadcast %3 : vector<5x1xi32> to vector<5x256xi32>
    %30 = vector.broadcast %12 : vector<1x256xi32> to vector<5x256xi32>
    %31 = arith.cmpi eq, %29, %30 : vector<5x256xi32>
    %cst_8 = arith.constant 0.000000e+00 : f32
    %32 = vector.broadcast %cst_8 : f32 to vector<5x256xf32>
    %33 = arith.select %31, %26, %32 : vector<5x256xi1>, vector<5x256xf32>
    %34 = vector.extract_strided_slice %33 {offsets = [0, 0], sizes = [5, 128], strides = [1, 1]} : vector<5x256xf32> to vector<5x128xf32>
    %35 = vector.extract_strided_slice %33 {offsets = [0, 128], sizes = [5, 128], strides = [1, 1]} : vector<5x256xf32> to vector<5x128xf32>
    %36 = arith.addf %34, %35 : vector<5x128xf32>
    %37 = arith.addf %4, %36 : vector<5x128xf32>
    %38 = vector.extract_strided_slice %26 {offsets = [0, 0], sizes = [5, 128], strides = [1, 1]} : vector<5x256xf32> to vector<5x128xf32>
    %39 = vector.extract_strided_slice %26 {offsets = [0, 128], sizes = [5, 128], strides = [1, 1]} : vector<5x256xf32> to vector<5x128xf32>
    %40 = arith.addf %38, %39 : vector<5x128xf32>
    %41 = arith.addf %4, %40 : vector<5x128xf32>
    %cst_9 = arith.constant 1.000000e+00 : f32
    %cst_10 = arith.constant 0.000000e+00 : f32
    %42 = vector.broadcast %cst_9 : f32 to vector<5x256xf32>
    %43 = vector.broadcast %cst_10 : f32 to vector<5x256xf32>
    %44 = arith.select %31, %42, %43 : vector<5x256xi1>, vector<5x256xf32>
    %45 = vector.extract_strided_slice %44 {offsets = [0, 0], sizes = [5, 128], strides = [1, 1]} : vector<5x256xf32> to vector<5x128xf32>
    %46 = vector.extract_strided_slice %44 {offsets = [0, 128], sizes = [5, 128], strides = [1, 1]} : vector<5x256xf32> to vector<5x128xf32>
    %47 = arith.addf %45, %46 : vector<5x128xf32>
    %48 = arith.addf %4, %47 : vector<5x128xf32>
    %49 = vector.broadcast %28 : vector<1x256xf32> to vector<5x256xf32>
    %50 = arith.subf %49, %9 : vector<5x256xf32>
    %cst_11 = arith.constant 0.000000e+00 : f32
    %51 = vector.broadcast %cst_11 : f32 to vector<5x256xf32>
    %52 = arith.select %31, %50, %51 : vector<5x256xi1>, vector<5x256xf32>
    %53 = vector.extract_strided_slice %52 {offsets = [0, 0], sizes = [5, 128], strides = [1, 1]} : vector<5x256xf32> to vector<5x128xf32>
    %54 = vector.extract_strided_slice %52 {offsets = [0, 128], sizes = [5, 128], strides = [1, 1]} : vector<5x256xf32> to vector<5x128xf32>
    %55 = arith.addf %53, %54 : vector<5x128xf32>
    %56 = arith.addf %4, %55 : vector<5x128xf32>
    %c1_i32 = arith.constant 1 : i32
    %c0_12 = arith.constant 0 : index
    %c0_13 = arith.constant 0 : index
    %c0_14 = arith.constant 0 : index
    %c0_15 = arith.constant 0 : index
    %c0_16 = arith.constant 0 : index
    %57 = vector.load %arg5[%c0_12, %c0_13, %c0_14, %c0_15, %c0_16] : memref<1x1x4x5x128xf32, #tpu.memory_space<vmem>>, vector<1x1x1x5x128xf32>
    %58 = vector.shape_cast %57 : vector<1x1x1x5x128xf32> to vector<5x128xf32>
    %59 = arith.addf %58, %37 : vector<5x128xf32>
    %c0_17 = arith.constant 0 : index
    %c0_18 = arith.constant 0 : index
    %c0_19 = arith.constant 0 : index
    %c0_20 = arith.constant 0 : index
    %c0_21 = arith.constant 0 : index
    %60 = vector.load %arg5[%c0_17, %c0_18, %c0_19, %c0_20, %c0_21] : memref<1x1x4x5x128xf32, #tpu.memory_space<vmem>>, vector<1x1x1x5x128xf32>
    %61 = vector.shape_cast %60 : vector<1x1x1x5x128xf32> to vector<5x128xf32>
    %62 = vector.shape_cast %59 : vector<5x128xf32> to vector<1x1x1x5x128xf32>
    tpu.vector_store %arg5[%c0_17, %c0_18, %c0_19, %c0_20, %c0_21], %62 {strides = array<i32>} : memref<1x1x4x5x128xf32, #tpu.memory_space<vmem>>, vector<1x1x1x5x128xf32>,
    %c0_22 = arith.constant 0 : index
    %c0_23 = arith.constant 0 : index
    %c1 = arith.constant 1 : index
    %c0_24 = arith.constant 0 : index
    %c0_25 = arith.constant 0 : index
    %63 = vector.load %arg5[%c0_22, %c0_23, %c1, %c0_24, %c0_25] : memref<1x1x4x5x128xf32, #tpu.memory_space<vmem>>, vector<1x1x1x5x128xf32>
    %64 = vector.shape_cast %63 : vector<1x1x1x5x128xf32> to vector<5x128xf32>
    %65 = arith.addf %64, %41 : vector<5x128xf32>
    %c0_26 = arith.constant 0 : index
    %c0_27 = arith.constant 0 : index
    %c1_28 = arith.constant 1 : index
    %c0_29 = arith.constant 0 : index
    %c0_30 = arith.constant 0 : index
    %66 = vector.load %arg5[%c0_26, %c0_27, %c1_28, %c0_29, %c0_30] : memref<1x1x4x5x128xf32, #tpu.memory_space<vmem>>, vector<1x1x1x5x128xf32>
    %67 = vector.shape_cast %66 : vector<1x1x1x5x128xf32> to vector<5x128xf32>
    %68 = vector.shape_cast %65 : vector<5x128xf32> to vector<1x1x1x5x128xf32>
    tpu.vector_store %arg5[%c0_26, %c0_27, %c1_28, %c0_29, %c0_30], %68 {strides = array<i32>} : memref<1x1x4x5x128xf32, #tpu.memory_space<vmem>>, vector<1x1x1x5x128xf32>,
    %c0_31 = arith.constant 0 : index
    %c0_32 = arith.constant 0 : index
    %c2 = arith.constant 2 : index
    %c0_33 = arith.constant 0 : index
    %c0_34 = arith.constant 0 : index
    %69 = vector.load %arg5[%c0_31, %c0_32, %c2, %c0_33, %c0_34] : memref<1x1x4x5x128xf32, #tpu.memory_space<vmem>>, vector<1x1x1x5x128xf32>
    %70 = vector.shape_cast %69 : vector<1x1x1x5x128xf32> to vector<5x128xf32>
    %71 = arith.addf %70, %48 : vector<5x128xf32>
    %c0_35 = arith.constant 0 : index
    %c0_36 = arith.constant 0 : index
    %c2_37 = arith.constant 2 : index
    %c0_38 = arith.constant 0 : index
    %c0_39 = arith.constant 0 : index
    %72 = vector.load %arg5[%c0_35, %c0_36, %c2_37, %c0_38, %c0_39] : memref<1x1x4x5x128xf32, #tpu.memory_space<vmem>>, vector<1x1x1x5x128xf32>
    %73 = vector.shape_cast %72 : vector<1x1x1x5x128xf32> to vector<5x128xf32>
    %74 = vector.shape_cast %71 : vector<5x128xf32> to vector<1x1x1x5x128xf32>
    tpu.vector_store %arg5[%c0_35, %c0_36, %c2_37, %c0_38, %c0_39], %74 {strides = array<i32>} : memref<1x1x4x5x128xf32, #tpu.memory_space<vmem>>, vector<1x1x1x5x128xf32>,
    %c0_40 = arith.constant 0 : index
    %c0_41 = arith.constant 0 : index
    %c3 = arith.constant 3 : index
    %c0_42 = arith.constant 0 : index
    %c0_43 = arith.constant 0 : index
    %75 = vector.load %arg5[%c0_40, %c0_41, %c3, %c0_42, %c0_43] : memref<1x1x4x5x128xf32, #tpu.memory_space<vmem>>, vector<1x1x1x5x128xf32>
    %76 = vector.shape_cast %75 : vector<1x1x1x5x128xf32> to vector<5x128xf32>
    %77 = arith.addf %76, %56 : vector<5x128xf32>
    %c0_44 = arith.constant 0 : index
    %c0_45 = arith.constant 0 : index
    %c3_46 = arith.constant 3 : index
    %c0_47 = arith.constant 0 : index
    %c0_48 = arith.constant 0 : index
    %78 = vector.load %arg5[%c0_44, %c0_45, %c3_46, %c0_47, %c0_48] : memref<1x1x4x5x128xf32, #tpu.memory_space<vmem>>, vector<1x1x1x5x128xf32>
    %79 = vector.shape_cast %78 : vector<1x1x1x5x128xf32> to vector<5x128xf32>
    %80 = vector.shape_cast %77 : vector<5x128xf32> to vector<1x1x1x5x128xf32>
    tpu.vector_store %arg5[%c0_44, %c0_45, %c3_46, %c0_47, %c0_48], %80 {strides = array<i32>} : memref<1x1x4x5x128xf32, #tpu.memory_space<vmem>>, vector<1x1x1x5x128xf32>,
    return
  }
  func.func @transform_0(%arg0: i32, %arg1: i32, %arg2: i32) -> (i32, i32, i32) {
    %c1_i32 = arith.constant 1 : i32
    %0 = arith.muli %arg1, %c1_i32 : i32
    %1 = arith.addi %0, %arg2 : i32
    %c0_i32 = arith.constant 0 : i32
    %c0_i32_0 = arith.constant 0 : i32
    return %arg0, %c0_i32, %1 : i32, i32, i32
  }
  func.func @transform_1(%arg0: i32, %arg1: i32, %arg2: i32) -> (i32, i32, i32) {
    %c1_i32 = arith.constant 1 : i32
    %0 = arith.muli %arg1, %c1_i32 : i32
    %1 = arith.addi %0, %arg2 : i32
    %c0_i32 = arith.constant 0 : i32
    %c0_i32_0 = arith.constant 0 : i32
    return %arg0, %c0_i32, %1 : i32, i32, i32
  }
  func.func @transform_2(%arg0: i32, %arg1: i32, %arg2: i32) -> (i32, i32, i32, i32, i32) {
    %c0_i32 = arith.constant 0 : i32
    %c0_i32_0 = arith.constant 0 : i32
    %c0_i32_1 = arith.constant 0 : i32
    %c0_i32_2 = arith.constant 0 : i32
    return %arg0, %arg1, %c0_i32, %c0_i32_0, %c0_i32_1 : i32, i32, i32, i32, i32
  }
}

</mosaic_0001>

<bundles_post_ra>
// kernel: tpu_custom_call.1
= control target key start
LH: loop header
LB: loop body
LE: loop exit
PB: predicated region body
PF: predicated region fallthrough
CT: control target
= control target key end

     0   :  { %s545_s9 = smov 0   ;;  %s547_s10 = smov 0   ;;  %s639_s0 = inlined_call_operand.vmem [shape: f32[2,5,256], index: 0, kind: input, shape index: {}]   ;;  %s640_s1 = inlined_call_operand.vmem [shape: s32[2,1,256], index: 1, kind: input, shape index: {}]   ;;  %s641_s2 = inlined_call_operand.vmem [shape: f32[2,1,4,5,128], index: 2, kind: output, shape index: {}]  }
   0x1   :  { %s549_s11 = smov 0  }
   0x2 LB: > { %s31_s12 = sadd.s32 1, %s523_s10  ;;  %p452_p0 = scmp.ge.s32.totalorder %s527_s11, 1  ;;  %s527_s11 = sphi %s549_s11, %s12_s11   ;;  %s523_s10 = sphi %s547_s10, %s643_s10   ;;  %s519_s9 = sphi %s545_s9, %s642_s9  }
   0x3   : > { %p33_p1 = scmp.ge.s32.totalorder %s31_s12, 2  ;;  %p164_p2 = scmp.lt.s32.totalorder %s527_s11, 3 }
   0x5   : > { %s645_s12 = smov (%p33_p1, %s31_s12), 0  ;;  %p165_p3 = pnand %p452_p0, %p164_p2 }
   0x6   : > { %p206_p4 = scmp.lt.s32.totalorder (!%p165_p3), %s519_s9, 1  ;;  %v244_v0 = vlaneseq (!%p165_p3)  ;;  %vm249_vm0 = vcmask (!%p165_p3), 1044480   ;;  %v529_v4 = vmov (!%p165_p3), 0.0  }
   0x7   : > { %168 = sbr.rel (%p165_p3) target bundleno = 86 (0x56), region = 28 }
   0x8   : > { %v563_v1 = vshrl.u32 (!%p165_p3), %v244_v0, 7 }
   0xa   : > { %v302_v2 = vsub.s32 (!%p165_p3), 0, %v563_v1  ;;  %v306_v3 = vsub.s32 (!%p165_p3), 1, %v563_v1 }
   0xe   : > { %s647_s9 = smov (!%p206_p4, %s519_s9), 1 }
   0xf   : > { %s467_s13 = sshll.u32 %s647_s9, 5  ;;  %s466_s14 = sshll.u32 %s647_s9, 4 }
  0x10   : > { %s568_s17 = scalar_lea.vmem %s641_s2, %s467_s13  ;;  %s213_s20 = scalar_lea.vmem %s639_s0, %s466_s14 }
  0x11   : > { %240 = vst [vmem:[%s568_s17] sm:$0x1f] %v529_v4  ;;  %241 = vst [vmem:[%s568_s17 + $0x8] sm:$0x1f] %v529_v4  ;;  %s455_s21 = sshll.u32 %s647_s9, 1  ;;  %v579_v5 = vld [vmem:[%s213_s20] sm:$0x1f] }
  0x12   : > { %242 = vst [vmem:[%s568_s17 + $0x10] sm:$0x1f] %v529_v4  ;;  %243 = vst [vmem:[%s568_s17 + $0x18] sm:$0x1f] %v529_v4  ;;  %v581_v6 = vld [vmem:[%s213_s20 + $0x8] sm:$0x1f]  ;;  %s224_s24 = scalar_lea.vmem %s640_s1, %s455_s21 }
  0x13   : > { %v250_v7 = vsel %vm249_vm0, %v579_v5, -inf  ;;  %v257_v8 = vsel %vm249_vm0, %v581_v6, -inf  ;;  %v248_v9 = vld [vmem:[%s224_s24] sm:$0x3] }
  0x14   : > { %v251_v10 = vrot.slane %v250_v7, 4  ;;  %v258_v11 = vrot.slane %v257_v8, 4  ;;  %v590_v12 = vrot.slane %v248_v9, %v302_v2  ;;  %v592_v13 = vrot.slane %v248_v9, %v306_v3 }
  0x16   : > { %v252_v14 = vmax.f32 %v250_v7, %v251_v10  ;;  %v259_v15 = vmax.f32 %v257_v8, %v258_v11  ;;  %vm308_vm1 = vcmp.eq.s32.totalorder %v563_v1, %v590_v12  ;;  %vm309_vm2 = vcmp.eq.s32.totalorder %v563_v1, %v592_v13 }
  0x17   : > { %v316_v18 = vsel %vm308_vm1, 1.0, %v529_v4  ;;  %v317_v19 = vsel %vm309_vm2, 1.0, %v529_v4 }
  0x18   : > { %v253_v16 = vrot.slane %v252_v14, 2  ;;  %v260_v17 = vrot.slane %v259_v15, 2  ;;  %v318_v20 = vadd.f32 %v317_v19, %v316_v18  ;;  %v458_v7 = vld [vmem:[%s568_s17 + $0x8] sm:$0x1f] }
  0x19   : > { %v460_v21 = vld [vmem:[%s568_s17 + $0x10] sm:$0x1f]  ;;  %v462_v11 = vld [vmem:[%s568_s17 + $0x18] sm:$0x1f] }
  0x1a   : > { %v254_v22 = vmax.f32 %v252_v14, %v253_v16  ;;  %v261_v23 = vmax.f32 %v259_v15, %v260_v17  ;;  %v335_v24 = vadd.f32 %v460_v21, %v318_v20 }
  0x1c   : > { %v255_v25 = vrot.slane %v254_v22, 1  ;;  %v262_v26 = vrot.slane %v261_v23, 1  ;;  %461 = vst [vmem:[%s568_s17 + $0x10] sm:$0x1f] %v335_v24 }
  0x1e   : > { %v256_v27 = vmax.f32 %v254_v22, %v255_v25  ;;  %v263_v28 = vmax.f32 %v261_v23, %v262_v26 }
  0x20   : > { %v264_v29 = vsub.f32 %v579_v5, %v256_v27  ;;  %v265_v30 = vsub.f32 %v581_v6, %v263_v28 }
  0x22   : > { %v266_v31 = vmul.f32 1.442695, %v264_v29  ;;  %v268_v32 = vmul.f32 1.442695, %v265_v30 }
  0x24   : > { %493 = vpow2.f32 %v266_v31 }
  0x25   : > { %495 = vpow2.f32 %v268_v32 }
  0x2e   : > { %v494_v33 = vpop.eup %493 }
  0x2f   : > { %v496_v34 = vpop.eup %495  ;;  %v270_v35 = vsel %vm249_vm0, %v494_v33, 0.0 }
  0x30   : > { %v271_v36 = vrot.slane %v270_v35, 4  ;;  %v277_v37 = vsel %vm249_vm0, %v496_v34, 0.0 }
  0x31   : > { %v278_v38 = vrot.slane %v277_v37, 4 }
  0x32   : > { %v272_v39 = vadd.f32 %v271_v36, %v270_v35 }
  0x33   : > { %v279_v40 = vadd.f32 %v278_v38, %v277_v37 }
  0x34   : > { %v273_v41 = vrot.slane %v272_v39, 2 }
  0x35   : > { %v280_v42 = vrot.slane %v279_v40, 2 }
  0x36   : > { %v274_v43 = vadd.f32 %v273_v41, %v272_v39 }
  0x37   : > { %v281_v44 = vadd.f32 %v280_v42, %v279_v40 }
  0x38   : > { %v275_v45 = vrot.slane %v274_v43, 1 }
  0x39   : > { %v282_v46 = vrot.slane %v281_v44, 1 }
  0x3a   : > { %v276_v47 = vadd.f32 %v275_v45, %v274_v43 }
  0x3b   : > { %v283_v48 = vadd.f32 %v282_v46, %v281_v44 }
  0x3c   : > { %497 = vrcp.f32 %v276_v47 }
  0x3d   : > { %499 = vrcp.f32 %v283_v48 }
  0x3e   : > { %501 = vlog2.f32 %v276_v47 }
  0x3f   : > { %503 = vlog2.f32 %v283_v48 }
  0x46   : > { %v498_v49 = vpop.eup %497 }
  0x47   : > { %v500_v50 = vpop.eup %499  ;;  %v286_v51 = vmul.f32 %v498_v49, %v276_v47 }
  0x48   : > { %v502_v52 = vpop.eup %501  ;;  %v287_v53 = vmul.f32 %v500_v50, %v283_v48 }
  0x49   : > { %v504_v54 = vpop.eup %503  ;;  %v288_v55 = vsub.f32 2.0, %v286_v51  ;;  %v295_v56 = vmul.f32 0.6931472, %v502_v52 }
  0x4a   : > { %v289_v57 = vsub.f32 2.0, %v287_v53  ;;  %v297_v58 = vmul.f32 0.6931472, %v504_v54 }
  0x4b   : > { %v290_v59 = vmul.f32 %v498_v49, %v288_v55  ;;  %v298_v60 = vadd.f32 %v295_v56, %v256_v27 }
  0x4c   : > { %v291_v61 = vmul.f32 %v500_v50, %v289_v57  ;;  %v299_v62 = vadd.f32 %v297_v58, %v263_v28 }
  0x4d   : > { %v292_v63 = vmul.f32 %v494_v33, %v290_v59  ;;  %v320_v0 = vsub.f32 %v298_v60, %v579_v5  ;;  %v326_v5 = vld [vmem:[%s568_s17] sm:$0x1f] }
  0x4e   : > { %v293_v2 = vmul.f32 %v496_v34, %v291_v61  ;;  %v321_v3 = vsub.f32 %v299_v62, %v581_v6 }
  0x4f   : > { %v310_v4 = vsel %vm308_vm1, %v292_v63, 0.0  ;;  %v322_v8 = vsel %vm308_vm1, %v320_v0, 0.0 }
  0x50   : > { %v311_v9 = vsel %vm309_vm2, %v293_v2, 0.0  ;;  %v314_v10 = vadd.f32 %v293_v2, %v292_v63  ;;  %v323_v6 = vsel %vm309_vm2, %v321_v3, 0.0 }
  0x51   : > { %v312_v14 = vadd.f32 %v311_v9, %v310_v4  ;;  %v324_v15 = vadd.f32 %v323_v6, %v322_v8 }
  0x52   : > { %v331_v16 = vadd.f32 %v458_v7, %v314_v10 }
  0x53   : > { %v327_v17 = vadd.f32 %v326_v5, %v312_v14  ;;  %v339_v18 = vadd.f32 %v462_v11, %v324_v15 }
  0x54   : > { %459 = vst [vmem:[%s568_s17 + $0x8] sm:$0x1f] %v331_v16 }
  0x55   : > { %328 = vst [vmem:[%s568_s17] sm:$0x1f] %v327_v17  ;;  %463 = vst [vmem:[%s568_s17 + $0x18] sm:$0x1f] %v339_v18 }
  0x56 PF: > { %s12_s11 = sadd.s32 1, %s527_s11   ;;  %s642_s9 = smov %s523_s10 }
  0x57   : > { %p9_p5 = scmp.ge.s32.totalorder %s12_s11, 4   ;;  %s643_s10 = smov %s645_s12 }
  0x59   :  { %11 = sbr.rel (!%p9_p5) target bundleno = 2 (0x2), region = 68 }

</bundles_post_ra>
